<compile_context>
chip_gen: v5e
topology: v5e:2x2
jax: 0.10.0
libtpu: 0.0.40
codegen_flags: <defaults>
</compile_context>

<pallas_src>
import functools

import jax
import jax.numpy as jnp
from jax.experimental import pallas as pl
from jax.experimental.pallas import tpu as pltpu


def _sage_gcn_kernel(src_ref, nbr_ref, w_self_ref, w_nbr_ref, out_ref):
    # src_ref:    (TN, D)
    # nbr_ref:    (TN, K*D)   lane-dense neighbor slab
    # w_self_ref: (D, H)
    # w_nbr_ref:  (K*D, H)    = tile(W_aggr / K, (K, 1)) -> mean folded into MXU
    self_hidden = jnp.dot(src_ref[...], w_self_ref[...],
                          preferred_element_type=jnp.float32)          # (TN, H)
    nbr_hidden = jnp.dot(nbr_ref[...], w_nbr_ref[...],
                         preferred_element_type=jnp.float32)           # (TN, H)
    out_ref[...] = jnp.maximum(self_hidden + nbr_hidden, 0.0).astype(out_ref.dtype)


@functools.partial(jax.jit, static_argnames=("tile_n", "vmem_limit_bytes"))
def sage_gcn_forward(src, nbr, w_self, w_nbr, *, tile_n=128, vmem_limit_bytes=None):
    N, D = src.shape
    _, K, _ = nbr.shape
    H = w_self.shape[1]

    tile_n = min(tile_n, N)
    assert N % tile_n == 0, "N must be divisible by the node tile size"

    # Lane-dense neighbor slab (contiguous reshape; no data movement).
    nbr_flat = nbr.reshape(N, K * D)
    # Fold the neighbor mean into the aggregator weight (built once per call;
    # a parameter-side constant in real usage).
    w_nbr_fused = jnp.tile(w_nbr, (K, 1)) * jnp.asarray(1.0 / K, dtype=w_nbr.dtype)

    grid = (N // tile_n,)
    return pl.pallas_call(
        _sage_gcn_kernel,
        out_shape=jax.ShapeDtypeStruct((N, H), src.dtype),
        grid_spec=pltpu.PrefetchScalarGridSpec(
            num_scalar_prefetch=0,
            grid=grid,
            in_specs=[
                pl.BlockSpec((tile_n, D), lambda i: (i, 0)),       # src tile
                pl.BlockSpec((tile_n, K * D), lambda i: (i, 0)),   # neighbor slab tile
                pl.BlockSpec((D, H), lambda i: (0, 0)),            # self weight (resident)
                pl.BlockSpec((K * D, H), lambda i: (0, 0)),        # fused aggregator weight
            ],
            out_specs=pl.BlockSpec((tile_n, H), lambda i: (i, 0)),
        ),
        compiler_params=pltpu.CompilerParams(
            dimension_semantics=("parallel",),
            vmem_limit_bytes=vmem_limit_bytes,
        ),
    )(src, nbr_flat, w_self, w_nbr_fused)


def kaiming_uniform(key, shape, dtype=jnp.float32):
    # Matches torch.nn.init.kaiming_uniform_ defaults (a=0, fan_in = shape[1]):
    # bound = sqrt(6 / fan_in)
    fan_in = shape[1]
    bound = (6.0 / fan_in) ** 0.5
    return jax.random.uniform(key, shape, dtype, minval=-bound, maxval=bound)


def sage_gcn_reference(src, nbr, w_self, w_nbr):
    agg = jnp.mean(nbr, axis=1)
    hidden = src @ w_self + agg @ w_nbr
    return jnp.maximum(hidden, 0.0)


if __name__ == "__main__":
    # Shapes consistent with the module: N nodes, K neighbors, input_dim D,
    # hidden_dim H.  N chosen so the 128-row node tile and the grid are exercised.
    N, K, D, H = 256, 8, 32, 32

    key = jax.random.PRNGKey(0)
    k_src, k_nbr, k_wself, k_wnbr = jax.random.split(key, 4)

    src = jax.random.normal(k_src, (N, D), dtype=jnp.float32)
    nbr = jax.random.normal(k_nbr, (N, K, D), dtype=jnp.float32)

    # Deterministic parameter init (synthetic; shapes per module __init__):
    w_self = kaiming_uniform(k_wself, (D, H))   # SageGCN.weight
    w_nbr = kaiming_uniform(k_wnbr, (D, H))     # Aggregator weight

    out = sage_gcn_forward(src, nbr, w_self, w_nbr, tile_n=128)
    out = jax.block_until_ready(out)

    ref = sage_gcn_reference(src, nbr, w_self, w_nbr)
    assert out.shape == (N, H)
    assert jnp.allclose(out, ref, atol=1e-5, rtol=1e-5), "mismatch vs reference"

    print("KERNEL_OK")
</pallas_src>

<mosaic_0001>
module attributes {stable_mosaic.version = 11 : i64} {
  func.func @_sage_gcn_kernel(%arg0: i32, %arg1: memref<128x32xf32, #tpu.memory_space<vmem>>, %arg2: memref<128x256xf32, #tpu.memory_space<vmem>>, %arg3: memref<32x32xf32, #tpu.memory_space<vmem>>, %arg4: memref<256x32xf32, #tpu.memory_space<vmem>>, %arg5: memref<128x32xf32, #tpu.memory_space<vmem>>) attributes {dimension_semantics = [#tpu.dimension_semantics<parallel>], iteration_bounds = array<i64: 2>, scalar_prefetch = 0 : i64, scratch_operands = 0 : i64, tpu.core_type = #tpu.core_type<tc>, window_params = [{transform_indices = @transform_0, window_bounds = array<i64: 128, 32>}, {transform_indices = @transform_1, window_bounds = array<i64: 128, 256>}, {pipeline_mode = #tpu.pipeline_mode<synchronous>, transform_indices = @transform_2, window_bounds = array<i64: 32, 32>}, {pipeline_mode = #tpu.pipeline_mode<synchronous>, transform_indices = @transform_3, window_bounds = array<i64: 256, 32>}, {transform_indices = @transform_4, window_bounds = array<i64: 128, 32>}]} {
    %c0 = arith.constant 0 : index
    %c0_0 = arith.constant 0 : index
    %0 = vector.load %arg1[%c0, %c0_0] : memref<128x32xf32, #tpu.memory_space<vmem>>, vector<128x32xf32>
    %c0_1 = arith.constant 0 : index
    %c0_2 = arith.constant 0 : index
    %1 = vector.load %arg3[%c0_1, %c0_2] : memref<32x32xf32, #tpu.memory_space<vmem>>, vector<32x32xf32>
    %cst = arith.constant dense<0.000000e+00> : vector<128x32xf32>
    %2 = tpu.matmul %0, %1, %cst {dimension_numbers = #tpu.dot_dimension_numbers<[1], [0], [0], [1], [0, 0, 1, 1], [], []>} : vector<128x32xf32>, vector<32x32xf32>, vector<128x32xf32> -> vector<128x32xf32>
    %c0_3 = arith.constant 0 : index
    %c0_4 = arith.constant 0 : index
    %3 = vector.load %arg2[%c0_3, %c0_4] : memref<128x256xf32, #tpu.memory_space<vmem>>, vector<128x256xf32>
    %c0_5 = arith.constant 0 : index
    %c0_6 = arith.constant 0 : index
    %4 = vector.load %arg4[%c0_5, %c0_6] : memref<256x32xf32, #tpu.memory_space<vmem>>, vector<256x32xf32>
    %cst_7 = arith.constant dense<0.000000e+00> : vector<128x32xf32>
    %5 = tpu.matmul %3, %4, %cst_7 {dimension_numbers = #tpu.dot_dimension_numbers<[1], [0], [0], [1], [0, 0, 1, 1], [], []>} : vector<128x256xf32>, vector<256x32xf32>, vector<128x32xf32> -> vector<128x32xf32>
    %6 = arith.addf %2, %5 : vector<128x32xf32>
    %cst_8 = arith.constant 0.000000e+00 : f32
    %7 = vector.broadcast %cst_8 : f32 to vector<128x32xf32>
    %8 = arith.maximumf %6, %7 : vector<128x32xf32>
    %c0_9 = arith.constant 0 : index
    %c0_10 = arith.constant 0 : index
    %9 = vector.load %arg5[%c0_9, %c0_10] : memref<128x32xf32, #tpu.memory_space<vmem>>, vector<128x32xf32>
    tpu.vector_store %arg5[%c0_9, %c0_10], %8 {strides = array<i32>} : memref<128x32xf32, #tpu.memory_space<vmem>>, vector<128x32xf32>,
    return
  }
  func.func @transform_0(%arg0: i32) -> (i32, i32) {
    %c0_i32 = arith.constant 0 : i32
    %c0_i32_0 = arith.constant 0 : i32
    return %arg0, %c0_i32 : i32, i32
  }
  func.func @transform_1(%arg0: i32) -> (i32, i32) {
    %c0_i32 = arith.constant 0 : i32
    %c0_i32_0 = arith.constant 0 : i32
    return %arg0, %c0_i32 : i32, i32
  }
  func.func @transform_2(%arg0: i32) -> (i32, i32) {
    %c0_i32 = arith.constant 0 : i32
    %c0_i32_0 = arith.constant 0 : i32
    %c0_i32_1 = arith.constant 0 : i32
    return %c0_i32, %c0_i32_0 : i32, i32
  }
  func.func @transform_3(%arg0: i32) -> (i32, i32) {
    %c0_i32 = arith.constant 0 : i32
    %c0_i32_0 = arith.constant 0 : i32
    %c0_i32_1 = arith.constant 0 : i32
    return %c0_i32, %c0_i32_0 : i32, i32
  }
  func.func @transform_4(%arg0: i32) -> (i32, i32) {
    %c0_i32 = arith.constant 0 : i32
    %c0_i32_0 = arith.constant 0 : i32
    return %arg0, %c0_i32 : i32, i32
  }
}

</mosaic_0001>

<bundles_post_ra>
// kernel: sage_gcn_forward.1
= control target key start
LH: loop header
LB: loop body
LE: loop exit
PB: predicated region body
PF: predicated region fallthrough
CT: control target
= control target key end

     0   :  { %s762_s15 = smov 0   ;;  %s1077_s0 = inlined_call_operand.vmem [shape: f32[256,32], index: 0, kind: input, shape index: {}]   ;;  %s1078_s1 = inlined_call_operand.vmem [shape: f32[256,256], index: 1, kind: input, shape index: {}]   ;;  %s1079_s2 = inlined_call_operand.vmem [shape: f32[32,32], index: 2, kind: input, shape index: {}]   ;;  %s1080_s3 = inlined_call_operand.vmem [shape: f32[256,32], index: 3, kind: input, shape index: {}]   ;;  %s1081_s4 = inlined_call_operand.vmem [shape: f32[256,32], index: 4, kind: output, shape index: {}]  }
   0x1 LB: > { %s654_s16 = sadd.s32 4294967295, %s735_s15   ;;  %p658_p0 = scmp.ge.s32.totalorder %s735_s15, 1  ;;  %s735_s15 = sphi %s762_s15, %s14_s15  }
   0x2   : > { %p175_p1 = scmp.lt.s32.totalorder %s735_s15, 3 }
   0x4   : > { %p176_p2 = pnand %p658_p0, %p175_p1 }
   0x5   : > { %s659_s23 = sshll.u32 (!%p176_p2), %s654_s16, 4 }
   0x6   : > { %179 = sbr.rel (%p176_p2) target bundleno = 271 (0x10f), region = 36  ;;  %p208_p3 = scmp.lt.s32.totalorder (!%p176_p2), %s659_s23, 31 }
   0xb   : > { %v293_v0 = vld [vmem:[%s1080_s3 + $0x78] sm:$0xff]  ;;  %v292_v3 = vld [vmem:[%s1080_s3 + $0x70] sm:$0xff]  ;;  %v291_v6 = vld [vmem:[%s1080_s3 + $0x68] sm:$0xff]  ;;  %s1083_s23 = smov (!%p208_p3, %s659_s23), 31  ;;  %vm440_vm0 = vcmask 261120  }
   0xc   : > { %v776_v1 = vld [vmem:[%s1080_s3 + $0xf8] sm:$0xff]  ;;  %310 = vmatpush.msra.mxu0 %v293_v0  ;;  %685 = vmatpush.msra.mxu3 %v293_v0  ;;  %v789_v4 = vld [vmem:[%s1080_s3 + $0xf0] sm:$0xff]  ;;  %v804_v7 = vld [vmem:[%s1080_s3 + $0xe8] sm:$0xff]  ;;  %s660_s17 = sshll.u32 %s1083_s23, 3  ;;  %s684_s10 = sshll.u32 %s1083_s23, 4 }
   0xd   : > { %v781_v2 = vld [vmem:[%s1079_s2 + $0x18] sm:$0xff]  ;;  %v794_v5 = vld [vmem:[%s1079_s2 + $0x10] sm:$0xff]  ;;  %375 = vmatpush.msra.mxu1 %v776_v1  ;;  %v809_v8 = vld [vmem:[%s1079_s2 + $0x8] sm:$0xff]  ;;  %s836_s20 = scalar_lea.vmem %s1077_s0, %s660_s17  ;;  %s940_s22 = scalar_lea.vmem %s1078_s1, %s684_s10 }
   0xe   : > { %501 = vmatpush.msra.mxu2 %v781_v2  ;;  %311 = vmatpush.msra.mxu0 %v292_v3  ;;  %v290_v9 = vld [vmem:[%s1080_s3 + $0x60] sm:$0xff]  ;;  %v289_v12 = vld [vmem:[%s1080_s3 + $0x58] sm:$0xff]  ;;  %v288_v15 = vld [vmem:[%s1080_s3 + $0x50] sm:$0xff]  ;;  %s1031_s6 = scalar_lea.vmem %s1081_s4, %s660_s17 }
   0xf   : > { %686 = vmatpush.msra.mxu3 %v292_v3  ;;  %376 = vmatpush.msra.mxu1 %v789_v4  ;;  %v821_v10 = vld [vmem:[%s1080_s3 + $0xe0] sm:$0xff]  ;;  %v845_v14 = vld [vmem:[%s1080_s3 + $0xd8] sm:$0xff]  ;;  %v856_v16 = vld [vmem:[%s1080_s3 + $0xd0] sm:$0xff] }
  0x10   : > { %502 = vmatpush.msra.mxu2 %v794_v5  ;;  %312 = vmatpush.msra.mxu0 %v291_v6  ;;  %v826_v11 = vld [vmem:[%s1079_s2] sm:$0xff]  ;;  %v287_v17 = vld [vmem:[%s1080_s3 + $0x48] sm:$0xff]  ;;  %v285_v22 = vld [vmem:[%s1080_s3 + $0x38] sm:$0xff] }
  0x11   : > { %687 = vmatpush.msra.mxu3 %v291_v6  ;;  %377 = vmatpush.msra.mxu1 %v804_v7  ;;  %v226_v13 = vld [vmem:[%s836_s20] sm:$0xff]  ;;  %v865_v18 = vld [vmem:[%s1080_s3 + $0xc8] sm:$0xff]  ;;  %v884_v23 = vld [vmem:[%s1080_s3 + $0xb8] sm:$0xff] }
  0x12   : > { %503 = vmatpush.msra.mxu2 %v809_v8  ;;  %313 = vmatpush.msra.mxu0 %v290_v9  ;;  %v286_v19 = vld [vmem:[%s1080_s3 + $0x40] sm:$0xff]  ;;  %v227_v21 = vld [vmem:[%s836_s20 + $0x8] sm:$0xff]  ;;  %v284_v24 = vld [vmem:[%s1080_s3 + $0x30] sm:$0xff] }
  0x13   : > { %688 = vmatpush.msra.mxu3 %v290_v9  ;;  %378 = vmatpush.msra.mxu1 %v821_v10  ;;  %v874_v20 = vld [vmem:[%s1080_s3 + $0xc0] sm:$0xff]  ;;  %v894_v25 = vld [vmem:[%s1080_s3 + $0xb0] sm:$0xff]  ;;  %v283_v26 = vld [vmem:[%s1080_s3 + $0x28] sm:$0xff] }
  0x14   : > { %504 = vmatpush.msra.mxu2 %v826_v11  ;;  %314 = vmatpush.msra.mxu0 %v289_v12  ;;  %v903_v27 = vld [vmem:[%s1080_s3 + $0xa8] sm:$0xff]  ;;  %v282_v28 = vld [vmem:[%s1080_s3 + $0x20] sm:$0xff]  ;;  %v228_v30 = vld [vmem:[%s836_s20 + $0x10] sm:$0xff] }
  0x15   : > { %666 = vmatmul.msk.f32.vlgmr.msra.gmra.mxu2 %vm440_vm0, %v226_v13  ;;  %689 = vmatpush.msra.mxu3 %v289_v12  ;;  %v912_v29 = vld [vmem:[%s1080_s3 + $0xa0] sm:$0xff]  ;;  %v281_v31 = vld [vmem:[%s1080_s3 + $0x18] sm:$0xff]  ;;  %v280_v33 = vld [vmem:[%s1080_s3 + $0x10] sm:$0xff] }
  0x16   : > { %379 = vmatpush.msra.mxu1 %v845_v14  ;;  %315 = vmatpush.msra.mxu0 %v288_v15  ;;  %v922_v32 = vld [vmem:[%s1080_s3 + $0x98] sm:$0xff]  ;;  %v296_v34 = vld [vmem:[%s1080_s3 + $0x90] sm:$0xff]  ;;  %v279_v35 = vld [vmem:[%s1080_s3 + $0x8] sm:$0xff] }
  0x17   : > { %690 = vmatpush.msra.mxu3 %v288_v15  ;;  %v295_v36 = vld [vmem:[%s1080_s3 + $0x88] sm:$0xff]  ;;  %v278_v37 = vld [vmem:[%s1080_s3] sm:$0xff]  ;;  %v229_v42 = vld [vmem:[%s836_s20 + $0x18] sm:$0xff] }
  0x18   : > { %380 = vmatpush.msra.mxu1 %v856_v16  ;;  %316 = vmatpush.msra.mxu0 %v287_v17  ;;  %v294_v38 = vld [vmem:[%s1080_s3 + $0x80] sm:$0xff]  ;;  %v247_v41 = vld [vmem:[%s940_s22 + $0x8] sm:$0xff]  ;;  %v248_v43 = vld [vmem:[%s940_s22 + $0x10] sm:$0xff] }
  0x19   : > { %691 = vmatpush.msra.mxu3 %v287_v17  ;;  %v246_v39 = vld [vmem:[%s940_s22] sm:$0xff]  ;;  %v272_v44 = vld [vmem:[%s940_s22 + $0xd0] sm:$0xff]  ;;  %v249_v45 = vld [vmem:[%s940_s22 + $0x18] sm:$0xff] }
  0x1a   : > { %381 = vmatpush.msra.mxu1 %v865_v18  ;;  %317 = vmatpush.msra.mxu0 %v286_v19  ;;  %v270_v40 = vld [vmem:[%s940_s22 + $0xc0] sm:$0xff]  ;;  %v251_v49 = vld [vmem:[%s940_s22 + $0x28] sm:$0xff]  ;;  %v252_v51 = vld [vmem:[%s940_s22 + $0x30] sm:$0xff] }
  0x1b   : > { %692 = vmatpush.msra.mxu3 %v286_v19  ;;  %v230_v46 = vld [vmem:[%s836_s20 + $0x20] sm:$0xff]  ;;  %v231_v50 = vld [vmem:[%s836_s20 + $0x28] sm:$0xff]  ;;  %v276_v52 = vld [vmem:[%s940_s22 + $0xf0] sm:$0xff] }
  0x1c   : > { %382 = vmatpush.msra.mxu1 %v874_v20  ;;  %318 = vmatpush.msra.mxu0 %v285_v22  ;;  %v250_v47 = vld [vmem:[%s940_s22 + $0x20] sm:$0xff]  ;;  %v253_v53 = vld [vmem:[%s940_s22 + $0x38] sm:$0xff]  ;;  %v232_v54 = vld [vmem:[%s836_s20 + $0x30] sm:$0xff] }
  0x1d   : > { %667 = vmatmul.msk.f32.gmra.mxu2 %vm440_vm0, %v227_v21  ;;  %693 = vmatpush.msra.mxu3 %v285_v22  ;;  %v274_v48 = vld [vmem:[%s940_s22 + $0xe0] sm:$0xff]  ;;  %v255_v56 = vld [vmem:[%s940_s22 + $0x48] sm:$0xff]  ;;  %v233_v58 = vld [vmem:[%s836_s20 + $0x38] sm:$0xff] }
  0x1e   : > { %383 = vmatpush.msra.mxu1 %v884_v23  ;;  %319 = vmatpush.msra.mxu0 %v284_v24  ;;  %v254_v55 = vld [vmem:[%s940_s22 + $0x40] sm:$0xff]  ;;  %v271_v57 = vld [vmem:[%s940_s22 + $0xc8] sm:$0xff]  ;;  %v256_v59 = vld [vmem:[%s940_s22 + $0x50] sm:$0xff] }
  0x1f   : > { %694 = vmatpush.msra.mxu3 %v284_v24  ;;  %v257_v60 = vld [vmem:[%s940_s22 + $0x58] sm:$0xff]  ;;  %v234_v62 = vld [vmem:[%s836_s20 + $0x40] sm:$0xff]  ;;  %v259_v0 = vld [vmem:[%s940_s22 + $0x68] sm:$0xff] }
  0x20   : > { %384 = vmatpush.msra.mxu1 %v894_v25  ;;  %320 = vmatpush.msra.mxu0 %v283_v26  ;;  %v273_v61 = vld [vmem:[%s940_s22 + $0xd8] sm:$0xff]  ;;  %v258_v63 = vld [vmem:[%s940_s22 + $0x60] sm:$0xff]  ;;  %v260_v3 = vld [vmem:[%s940_s22 + $0x70] sm:$0xff] }
  0x21   : > { %695 = vmatpush.msra.mxu3 %v283_v26  ;;  %v236_v6 = vld [vmem:[%s836_s20 + $0x50] sm:$0xff]  ;;  %v241_v9 = vld [vmem:[%s836_s20 + $0x78] sm:$0xff]  ;;  %v238_v13 = vld [vmem:[%s836_s20 + $0x60] sm:$0xff] }
  0x22   : > { %385 = vmatpush.msra.mxu1 %v903_v27  ;;  %321 = vmatpush.msra.mxu0 %v282_v28  ;;  %v265_v12 = vld [vmem:[%s940_s22 + $0x98] sm:$0xff]  ;;  %v267_v15 = vld [vmem:[%s940_s22 + $0xa8] sm:$0xff]  ;;  %v268_v17 = vld [vmem:[%s940_s22 + $0xb0] sm:$0xff] }
  0x23   : > { %696 = vmatpush.msra.mxu3 %v282_v28  ;;  %v240_v19 = vld [vmem:[%s836_s20 + $0x70] sm:$0xff] }
  0x24   : > { %386 = vmatpush.msra.mxu1 %v912_v29  ;;  %322 = vmatpush.msra.mxu0 %v281_v31 }
  0x25   : > { %668 = vmatmul.msk.f32.gmra.mxu2 %vm440_vm0, %v228_v30  ;;  %697 = vmatpush.msra.mxu3 %v281_v31 }
  0x26   : > { %387 = vmatpush.msra.mxu1 %v922_v32  ;;  %323 = vmatpush.msra.mxu0 %v280_v33 }
  0x27   : > { %698 = vmatpush.msra.mxu3 %v280_v33 }
  0x28   : > { %388 = vmatpush.msra.mxu1 %v296_v34  ;;  %324 = vmatpush.msra.mxu0 %v279_v35 }
  0x29   : > { %699 = vmatpush.msra.mxu3 %v279_v35 }
  0x2a   : > { %389 = vmatpush.msra.mxu1 %v295_v36  ;;  %325 = vmatpush.msra.mxu0 %v278_v37 }
  0x2b   : > { %700 = vmatpush.msra.mxu3 %v278_v37  ;;  %326 = vmatmul.f32.vlgmr.msra.gmra.mxu0 %v246_v39 }
  0x2c   : > { %390 = vmatpush.msra.mxu1 %v294_v38  ;;  %362 = vmatmul.f32.vlgmr.msra.gmra.mxu3 %v270_v40 }
  0x2d   : > { %391 = vmatmul.f32.vlgmr.msra.gmra.mxu1 %v247_v41  ;;  %669 = vmatmul.msk.f32.gmra.mxu2 %vm440_vm0, %v229_v42 }
  0x2e   : > { %701 = vmatpush.msrb.mxu3 %v776_v1  ;;  %v275_v1 = vld [vmem:[%s940_s22 + $0xe8] sm:$0xff] }
  0x30   : > { %702 = vmatpush.msrb.mxu3 %v789_v4  ;;  %v261_v4 = vld [vmem:[%s940_s22 + $0x78] sm:$0xff] }
  0x32   : > { %703 = vmatpush.msrb.mxu3 %v804_v7  ;;  %v262_v7 = vld [vmem:[%s940_s22 + $0x80] sm:$0xff] }
  0x33   : > { %329 = vmatmul.f32.gmra.mxu0 %v248_v43 }
  0x34   : > { %704 = vmatpush.msrb.mxu3 %v821_v10  ;;  %v237_v10 = vld [vmem:[%s836_s20 + $0x58] sm:$0xff] }
  0x35   : > { %365 = vmatmul.f32.gmra.mxu3 %v272_v44  ;;  %394 = vmatmul.f32.gmra.mxu1 %v249_v45 }
  0x36   : > { %670 = vmatmul.msk.f32.gmra.mxu2 %vm440_vm0, %v230_v46  ;;  %705 = vmatpush.msrb.mxu3 %v845_v14  ;;  %v266_v14 = vld [vmem:[%s940_s22 + $0xa0] sm:$0xff] }
  0x38   : > { %706 = vmatpush.msrb.mxu3 %v856_v16  ;;  %v239_v16 = vld [vmem:[%s836_s20 + $0x68] sm:$0xff] }
  0x3a   : > { %707 = vmatpush.msrb.mxu3 %v865_v18  ;;  %v269_v18 = vld [vmem:[%s940_s22 + $0xb8] sm:$0xff] }
  0x3b   : > { %332 = vmatmul.f32.gmra.mxu0 %v250_v47 }
  0x3c   : > { %708 = vmatpush.msrb.mxu3 %v874_v20 }
  0x3d   : > { %368 = vmatmul.f32.gmra.mxu3 %v274_v48  ;;  %397 = vmatmul.f32.gmra.mxu1 %v251_v49 }
  0x3e   : > { %671 = vmatmul.msk.f32.gmra.mxu2 %vm440_vm0, %v231_v50  ;;  %709 = vmatpush.msrb.mxu3 %v884_v23 }
  0x40   : > { %710 = vmatpush.msrb.mxu3 %v894_v25 }
  0x42   : > { %711 = vmatpush.msrb.mxu3 %v903_v27 }
  0x43   : > { %335 = vmatmul.f32.gmra.mxu0 %v252_v51 }
  0x44   : > { %712 = vmatpush.msrb.mxu3 %v912_v29 }
  0x45   : > { %371 = vmatmul.f32.gmra.mxu3 %v276_v52  ;;  %400 = vmatmul.f32.gmra.mxu1 %v253_v53 }
  0x46   : > { %672 = vmatmul.msk.f32.gmra.mxu2 %vm440_vm0, %v232_v54  ;;  %713 = vmatpush.msrb.mxu3 %v922_v32 }
  0x48   : > { %714 = vmatpush.msrb.mxu3 %v296_v34 }
  0x4a   : > { %715 = vmatpush.msrb.mxu3 %v295_v36 }
  0x4b   : > { %338 = vmatmul.f32.gmra.mxu0 %v254_v55 }
  0x4c   : > { %716 = vmatpush.msrb.mxu3 %v294_v38 }
  0x4d   : > { %403 = vmatmul.f32.gmra.mxu1 %v255_v56  ;;  %427 = vmatmul.f32.vlgmr.msrb.gmra.mxu3 %v271_v57 }
  0x4e   : > { %673 = vmatmul.msk.f32.gmra.mxu2 %vm440_vm0, %v233_v58  ;;  %717 = vmatpush.msra.mxu3 %v781_v2  ;;  %v235_v2 = vld [vmem:[%s836_s20 + $0x48] sm:$0xff] }
  0x50   : > { %718 = vmatpush.msra.mxu3 %v794_v5  ;;  %v277_v5 = vld [vmem:[%s940_s22 + $0xf8] sm:$0xff] }
  0x52   : > { %719 = vmatpush.msra.mxu3 %v809_v8  ;;  %v263_v8 = vld [vmem:[%s940_s22 + $0x88] sm:$0xff] }
  0x53   : > { %341 = vmatmul.f32.gmra.mxu0 %v256_v59 }
  0x54   : > { %720 = vmatpush.msra.mxu3 %v826_v11  ;;  %v264_v11 = vld [vmem:[%s940_s22 + $0x90] sm:$0xff] }
  0x55   : > { %406 = vmatmul.f32.gmra.mxu1 %v257_v60  ;;  %430 = vmatmul.f32.gmra.mxu3 %v273_v61 }
  0x56   : > { %674 = vmatmul.msk.f32.gmra.mxu2 %vm440_vm0, %v234_v62 }
  0x5b   : > { %344 = vmatmul.f32.gmra.mxu0 %v258_v63 }
  0x5d   : > { %409 = vmatmul.f32.gmra.mxu1 %v259_v0  ;;  %433 = vmatmul.f32.gmra.mxu3 %v275_v1 }
  0x5e   : > { %675 = vmatmul.msk.f32.gmra.mxu2 %vm440_vm0, %v235_v2 }
  0x63   : > { %347 = vmatmul.f32.gmra.mxu0 %v260_v3 }
  0x65   : > { %412 = vmatmul.f32.gmra.mxu1 %v261_v4  ;;  %436 = vmatmul.f32.gmra.mxu3 %v277_v5 }
  0x66   : > { %676 = vmatmul.msk.f32.gmra.mxu2 %vm440_vm0, %v236_v6 }
  0x6b   : > { %350 = vmatmul.f32.gmra.mxu0 %v262_v7 }
  0x6d   : > { %415 = vmatmul.f32.gmra.mxu1 %v263_v8  ;;  %681 = vmatmul.msk.f32.vlgmr.msra.gmra.mxu3 %vm440_vm0, %v241_v9 }
  0x6e   : > { %677 = vmatmul.msk.f32.gmra.mxu2 %vm440_vm0, %v237_v10 }
  0x73   : > { %353 = vmatmul.f32.gmra.mxu0 %v264_v11 }
  0x75   : > { %418 = vmatmul.f32.gmra.mxu1 %v265_v12 }
  0x76   : > { %678 = vmatmul.msk.f32.gmra.mxu2 %vm440_vm0, %v238_v13 }
  0x7b   : > { %356 = vmatmul.f32.gmra.mxu0 %v266_v14 }
  0x7d   : > { %421 = vmatmul.f32.gmra.mxu1 %v267_v15 }
  0x7e   : > { %679 = vmatmul.msk.f32.gmra.mxu2 %vm440_vm0, %v239_v16 }
  0x83   : > { %359 = vmatmul.f32.gmra.mxu0 %v268_v17 }
  0x85   : > { %424 = vmatmul.f32.gmra.mxu1 %v269_v18 }
  0x86   : > { %680 = vmatmul.msk.f32.gmra.mxu2 %vm440_vm0, %v240_v19 }
  0x98   : > { %v506_v20 = vpop.f32.mrf.mxu2 }
  0xa0   : > { %v509_v21 = vpop.f32.mrf.mxu2 }
  0xa8   : > { %v512_v22 = vpop.f32.mrf.mxu2  ;;  %v327_v23 = vpop.f32.mrf.mxu0 }
  0xaa   : > { %v392_v24 = vpop.f32.mrf.mxu1 }
  0xab   : > { %v393_v25 = vadd.f32 %v392_v24, %v327_v23 }
  0xad   : > { %v507_v26 = vadd.f32 %v506_v20, %v393_v25 }
  0xaf   : > { %v554_v27 = vmax.f32 %v507_v26, 0.0  ;;  %v1033_v28 = vpop.f32.mrf.mxu3 }
  0xb0   : > { %v515_v29 = vpop.f32.mrf.mxu2  ;;  %v330_v30 = vpop.f32.mrf.mxu0 }
  0xb1   : > { %570 = vst.msk [vmem:[%s1031_s6] sm:$0xff] %vm440_vm0, %v554_v27 }
  0xb2   : > { %v395_v31 = vpop.f32.mrf.mxu1 }
  0xb3   : > { %v396_v32 = vadd.f32 %v395_v31, %v330_v30 }
  0xb5   : > { %v510_v33 = vadd.f32 %v509_v21, %v396_v32 }
  0xb7   : > { %v555_v34 = vmax.f32 %v510_v33, 0.0 }
  0xb8   : > { %v1037_v35 = vpop.f32.mrf.mxu3  ;;  %v333_v37 = vpop.f32.mrf.mxu0 }
  0xb9   : > { %571 = vst.msk [vmem:[%s1031_s6 + $0x8] sm:$0xff] %vm440_vm0, %v555_v34  ;;  %v518_v36 = vpop.f32.mrf.mxu2 }
  0xba   : > { %v398_v38 = vpop.f32.mrf.mxu1 }
  0xbb   : > { %v399_v39 = vadd.f32 %v398_v38, %v333_v37 }
  0xbd   : > { %v513_v40 = vadd.f32 %v512_v22, %v399_v39 }
  0xbf   : > { %v556_v41 = vmax.f32 %v513_v40, 0.0 }
  0xc0   : > { %v1041_v42 = vpop.f32.mrf.mxu3  ;;  %v336_v44 = vpop.f32.mrf.mxu0 }
  0xc1   : > { %572 = vst.msk [vmem:[%s1031_s6 + $0x10] sm:$0xff] %vm440_vm0, %v556_v41  ;;  %v521_v43 = vpop.f32.mrf.mxu2 }
  0xc2   : > { %v401_v45 = vpop.f32.mrf.mxu1 }
  0xc3   : > { %v402_v46 = vadd.f32 %v401_v45, %v336_v44 }
  0xc5   : > { %v516_v47 = vadd.f32 %v515_v29, %v402_v46 }
  0xc7   : > { %v557_v48 = vmax.f32 %v516_v47, 0.0 }
  0xc8   : > { %v372_v49 = vpop.f32.mrf.mxu3  ;;  %v339_v51 = vpop.f32.mrf.mxu0 }
  0xc9   : > { %573 = vst.msk [vmem:[%s1031_s6 + $0x18] sm:$0xff] %vm440_vm0, %v557_v48  ;;  %v524_v50 = vpop.f32.mrf.mxu2 }
  0xca   : > { %v404_v52 = vpop.f32.mrf.mxu1 }
  0xcb   : > { %v405_v53 = vadd.f32 %v404_v52, %v339_v51 }
  0xcd   : > { %v519_v54 = vadd.f32 %v518_v36, %v405_v53 }
  0xcf   : > { %v558_v55 = vmax.f32 %v519_v54, 0.0 }
  0xd0   : > { %v428_v56 = vpop.f32.mrf.mxu3  ;;  %v342_v58 = vpop.f32.mrf.mxu0 }
  0xd1   : > { %574 = vst.msk [vmem:[%s1031_s6 + $0x20] sm:$0xff] %vm440_vm0, %v558_v55  ;;  %v527_v57 = vpop.f32.mrf.mxu2  ;;  %v429_v31 = vadd.f32 %v428_v56, %v1033_v28 }
  0xd2   : > { %v407_v59 = vpop.f32.mrf.mxu1 }
  0xd3   : > { %v408_v60 = vadd.f32 %v407_v59, %v342_v58 }
  0xd5   : > { %v522_v61 = vadd.f32 %v521_v43, %v408_v60 }
  0xd7   : > { %v559_v62 = vmax.f32 %v522_v61, 0.0 }
  0xd8   : > { %v431_v63 = vpop.f32.mrf.mxu3  ;;  %v345_v1 = vpop.f32.mrf.mxu0 }
  0xd9   : > { %575 = vst.msk [vmem:[%s1031_s6 + $0x28] sm:$0xff] %vm440_vm0, %v559_v62  ;;  %v530_v0 = vpop.f32.mrf.mxu2  ;;  %v432_v41 = vadd.f32 %v431_v63, %v1037_v35 }
  0xda   : > { %v410_v2 = vpop.f32.mrf.mxu1 }
  0xdb   : > { %v411_v3 = vadd.f32 %v410_v2, %v345_v1 }
  0xdd   : > { %v525_v4 = vadd.f32 %v524_v50, %v411_v3 }
  0xdf   : > { %v560_v5 = vmax.f32 %v525_v4, 0.0 }
  0xe0   : > { %v434_v6 = vpop.f32.mrf.mxu3  ;;  %v348_v8 = vpop.f32.mrf.mxu0 }
  0xe1   : > { %576 = vst.msk [vmem:[%s1031_s6 + $0x30] sm:$0xff] %vm440_vm0, %v560_v5  ;;  %v533_v7 = vpop.f32.mrf.mxu2  ;;  %v435_v50 = vadd.f32 %v434_v6, %v1041_v42 }
  0xe2   : > { %v413_v9 = vpop.f32.mrf.mxu1 }
  0xe3   : > { %v414_v10 = vadd.f32 %v413_v9, %v348_v8 }
  0xe5   : > { %v528_v11 = vadd.f32 %v527_v57, %v414_v10 }
  0xe7   : > { %v561_v12 = vmax.f32 %v528_v11, 0.0 }
  0xe8   : > { %v437_v13 = vpop.f32.mrf.mxu3  ;;  %v351_v15 = vpop.f32.mrf.mxu0 }
  0xe9   : > { %577 = vst.msk [vmem:[%s1031_s6 + $0x38] sm:$0xff] %vm440_vm0, %v561_v12  ;;  %v536_v14 = vpop.f32.mrf.mxu2  ;;  %v438_v19 = vadd.f32 %v437_v13, %v372_v49 }
  0xea   : > { %v416_v16 = vpop.f32.mrf.mxu1 }
  0xeb   : > { %v417_v17 = vadd.f32 %v416_v16, %v351_v15 }
  0xed   : > { %v531_v18 = vadd.f32 %v530_v0, %v417_v17 }
  0xef   : > { %v562_v20 = vmax.f32 %v531_v18, 0.0 }
  0xf0   : > { %v551_v21 = vpop.f32.mrf.mxu3  ;;  %v354_v24 = vpop.f32.mrf.mxu0 }
  0xf1   : > { %578 = vst.msk [vmem:[%s1031_s6 + $0x40] sm:$0xff] %vm440_vm0, %v562_v20  ;;  %v539_v22 = vpop.f32.mrf.mxu2  ;;  %v552_v23 = vadd.f32 %v551_v21, %v438_v19 }
  0xf2   : > { %v419_v25 = vpop.f32.mrf.mxu1 }
  0xf3   : > { %v569_v26 = vmax.f32 %v552_v23, 0.0  ;;  %v420_v27 = vadd.f32 %v419_v25, %v354_v24 }
  0xf5   : > { %585 = vst.msk [vmem:[%s1031_s6 + $0x78] sm:$0xff] %vm440_vm0, %v569_v26  ;;  %v534_v29 = vadd.f32 %v533_v7, %v420_v27 }
  0xf7   : > { %v563_v30 = vmax.f32 %v534_v29, 0.0 }
  0xf8   : > { %v357_v33 = vpop.f32.mrf.mxu0 }
  0xf9   : > { %579 = vst.msk [vmem:[%s1031_s6 + $0x48] sm:$0xff] %vm440_vm0, %v563_v30  ;;  %v542_v32 = vpop.f32.mrf.mxu2 }
  0xfa   : > { %v543_v34 = vadd.f32 %v542_v32, %v429_v31  ;;  %v422_v36 = vpop.f32.mrf.mxu1 }
  0xfb   : > { %v423_v37 = vadd.f32 %v422_v36, %v357_v33 }
  0xfc   : > { %v566_v38 = vmax.f32 %v543_v34, 0.0 }
  0xfd   : > { %v537_v39 = vadd.f32 %v536_v14, %v423_v37 }
  0xfe   : > { %582 = vst.msk [vmem:[%s1031_s6 + $0x60] sm:$0xff] %vm440_vm0, %v566_v38 }
  0xff   : > { %v564_v40 = vmax.f32 %v537_v39, 0.0 }
 0x100   : > { %v360_v43 = vpop.f32.mrf.mxu0 }
 0x101   : > { %580 = vst.msk [vmem:[%s1031_s6 + $0x50] sm:$0xff] %vm440_vm0, %v564_v40  ;;  %v545_v28 = vpop.f32.mrf.mxu2 }
 0x102   : > { %v546_v44 = vadd.f32 %v545_v28, %v432_v41  ;;  %v425_v45 = vpop.f32.mrf.mxu1 }
 0x103   : > { %v426_v46 = vadd.f32 %v425_v45, %v360_v43 }
 0x104   : > { %v567_v47 = vmax.f32 %v546_v44, 0.0 }
 0x105   : > { %v540_v48 = vadd.f32 %v539_v22, %v426_v46 }
 0x106   : > { %583 = vst.msk [vmem:[%s1031_s6 + $0x68] sm:$0xff] %vm440_vm0, %v567_v47 }
 0x107   : > { %v565_v49 = vmax.f32 %v540_v48, 0.0 }
 0x109   : > { %581 = vst.msk [vmem:[%s1031_s6 + $0x58] sm:$0xff] %vm440_vm0, %v565_v49  ;;  %v548_v51 = vpop.f32.mrf.mxu2 }
 0x10a   : > { %v549_v52 = vadd.f32 %v548_v51, %v435_v50 }
 0x10c   : > { %v568_v35 = vmax.f32 %v549_v52, 0.0 }
 0x10e   : > { %584 = vst.msk [vmem:[%s1031_s6 + $0x70] sm:$0xff] %vm440_vm0, %v568_v35 }
 0x10f PF: > { %s14_s15 = sadd.s32 1, %s735_s15  }
 0x110   : > { %p11_p4 = scmp.ge.s32.totalorder %s14_s15, 4  }
 0x112   :  { %13 = sbr.rel (!%p11_p4) target bundleno = 1 (0x1), region = 69 }

</bundles_post_ra>
